<compile_context>
chip_gen: v5e
topology: v5e:2x2
jax: 0.10.0
libtpu: 0.0.40
codegen_flags: <defaults>
</compile_context>

<pallas_src>
import math
import functools

import jax
import jax.numpy as jnp
from jax.experimental import pallas as pl
from jax.experimental.pallas import tpu as pltpu


def _round_up(n, m):
    return ((n + m - 1) // m) * m


def _pick_co_tile(cout):
    """Largest Cout tile <= 256 that keeps BlockSpec constraints (mult of 8 or full)."""
    if cout <= 256:
        return cout
    for cand in range(256, 7, -8):
        if cout % cand == 0:
            return cand
    return cout


def conv2d_weight_modulate(x, s, weight, *, demodulate=True, eps=1e-8,
                           out_dtype=jnp.float32, lt_target=1024):
    """Pallas implementation of Conv2dWeightModulate.forward.

    x:      (B, Cin, H, W)    float32
    s:      (B, Cin)          float32
    weight: (Cout, Cin, K, K) float32 (the *unscaled* EqualizedWeight param)
    returns (B, Cout, H, W)   out_dtype (float32 default)
    """
    B, Cin, H, W = x.shape
    Cout, Cin_w, K, K2 = weight.shape
    assert Cin_w == Cin and K == K2
    pad = (K - 1) // 2
    Hp, Wp = H + 2 * pad, W + 2 * pad
    KK = K * K
    KKC = KK * Cin
    c_scale = 1.0 / math.sqrt(Cin * K * K)          # EqualizedWeight scale

    # Flat padded-spatial layout: output (h, w) lives at flat p = h*Wp + w,
    # tap (kh, kw) reads flat p + kh*Wp + kw.
    Lout = (H - 1) * Wp + W                          # span of all valid outputs
    d_max = (K - 1) * Wp + (K - 1)                   # largest tap offset
    Dpad = _round_up(max(d_max, 1), 128)             # lane-aligned halo width
    Lt = max(Dpad, min(_round_up(lt_target, 128), _round_up(Lout, 128)))
    T = -(-Lout // Lt)                               # number of spatial tiles
    Ltot = T * Lt
    Xblk = Lt + Dpad                                 # per-tile x window (mult of 128)
    Xtot = max((T + 1) * Lt, Hp * Wp)                # padded flat x length

    co_tile = _pick_co_tile(Cout)
    CO = Cout // co_tile

    # ---- glue: pad x, flatten spatial, build haloed spatial tiles -----------
    xp = jnp.pad(x.astype(jnp.float32), ((0, 0), (0, 0), (pad, pad), (pad, pad)))
    xflat = xp.reshape(B, Cin, Hp * Wp)
    xflat = jnp.pad(xflat, ((0, 0), (0, 0), (0, Xtot - Hp * Wp)))
    xflat = xflat.astype(jnp.bfloat16)                               # halve DMA bytes
    # Tile t needs xflat[t*Lt : t*Lt + Xblk]; build non-overlapping haloed
    # tiles with two reshapes + one concat (layout plumbing, no gather).
    main = xflat[:, :, :Ltot].reshape(B, Cin, T, Lt)
    halo = xflat[:, :, Lt:Lt + Ltot].reshape(B, Cin, T, Lt)[:, :, :, :Dpad]
    x_tiles = jnp.concatenate([main, halo], axis=-1)                 # (B,Cin,T,Xblk)
    x_tiles = jnp.transpose(x_tiles, (0, 2, 1, 3))                   # (B,T,Cin,Xblk)

    # ---- glue: weights / styles ---------------------------------------------
    # Stacked weight layout (Cout, KK*Cin), column (kh*K+kw)*Cin + c — bf16.
    wstk = jnp.transpose(weight.astype(jnp.float32), (0, 2, 3, 1))   # (Cout,K,K,Cin)
    wstk = wstk.reshape(Cout, KKC).astype(jnp.bfloat16)
    w2 = jnp.sum(weight.astype(jnp.float32) ** 2, axis=(2, 3))       # (Cout,Cin) f32
    cs = s.astype(jnp.float32) * c_scale                             # c folded in
    s3 = cs.reshape(B, 1, Cin)                                       # for sigma
    st = jnp.tile(cs, (1, KK)).reshape(B, 1, KKC)                    # matches wstk cols

    # ---- Pallas kernel -------------------------------------------------------
    def kernel(s_ref, st_ref, w2_ref, w_ref, x_ref, o_ref, wmod_ref, xstk_ref):
        t = pl.program_id(2)

        # (Re)build modulated + demodulated bf16 weights once per (batch, co-tile).
        @pl.when(t == 0)
        def _():
            wm = w_ref[...].astype(jnp.float32) * st_ref[...]        # (co_tile, KK*Cin)
            if demodulate:
                srow = s_ref[...]                                    # (1, Cin) f32
                sq = jnp.sum(w2_ref[...] * (srow * srow), axis=1, keepdims=True)
                wm = wm * jax.lax.rsqrt(sq + eps)                    # (co_tile, 1) bcast
            wmod_ref[...] = wm.astype(jnp.bfloat16)

        # Stack the KK shifted tap views of this spatial tile (no im2col in HBM).
        for idx in range(KK):                                        # static unroll
            kh, kw = idx // K, idx % K
            d = kh * Wp + kw
            xstk_ref[pl.ds(idx * Cin, Cin), :] = x_ref[:, pl.ds(d, Lt)]
        # TODO(synk): stage these tap copies via local async DMAs to move the
        # lane realignment off the vector-extended slot (v6e/v7x) once
        # unaligned minor-dim local DMA lowering is confirmed.

        # One MXU matmul: full KK*Cin contraction, single output store.
        o_ref[...] = jnp.dot(wmod_ref[...], xstk_ref[...],
                             preferred_element_type=jnp.float32).astype(o_ref.dtype)

    # ---- VMEM budget (generation-aware) --------------------------------------
    out_isz = jnp.dtype(out_dtype).itemsize
    est = (2 * Cin * Xblk * 2            # x tile, bf16, double-buffered
           + 2 * co_tile * Lt * out_isz  # output tile, double-buffered
           + 2 * co_tile * KKC * 2       # stacked bf16 weights
           + 2 * co_tile * Cin * 4       # W2
           + 2 * (Cin + KKC) * 4         # styles
           + co_tile * KKC * 2           # modulated-weight scratch
           + KKC * Lt * 2)               # stacked-tap scratch
    try:
        cap = int(pltpu.get_tpu_info().vmem_capacity_bytes)
    except Exception:
        cap = 64 * 2 ** 20               # conservative (v7x per-core VMEM)
    vmem_limit = int(min(cap - 12 * 2 ** 20,
                         max(2 * est + (8 << 20), 32 << 20)))

    out_flat = pl.pallas_call(
        kernel,
        out_shape=jax.ShapeDtypeStruct((B, Cout, Ltot), out_dtype),
        grid_spec=pltpu.PrefetchScalarGridSpec(
            num_scalar_prefetch=0,
            grid=(B, CO, T),
            in_specs=[
                pl.BlockSpec((None, 1, Cin), lambda b, co, t: (b, 0, 0)),      # c*s
                pl.BlockSpec((None, 1, KKC), lambda b, co, t: (b, 0, 0)),      # tiled c*s
                pl.BlockSpec((co_tile, Cin), lambda b, co, t: (co, 0)),        # W2 (f32)
                pl.BlockSpec((co_tile, KKC), lambda b, co, t: (co, 0)),        # weights (bf16)
                pl.BlockSpec((None, None, Cin, Xblk), lambda b, co, t: (b, t, 0, 0)),  # x tile
            ],
            out_specs=pl.BlockSpec((None, co_tile, Lt), lambda b, co, t: (b, co, t)),
            scratch_shapes=[
                pltpu.VMEM((co_tile, KKC), jnp.bfloat16),   # cached modulated weights
                pltpu.VMEM((KKC, Lt), jnp.bfloat16),        # stacked tap views
            ],
        ),
        compiler_params=pltpu.CompilerParams(
            dimension_semantics=("parallel", "parallel", "arbitrary"),
            vmem_limit_bytes=vmem_limit),
    )(s3, st, w2, wstk, x_tiles)

    # ---- glue: strip flat-padded layout back to NCHW -------------------------
    need = H * Wp
    if Ltot >= need:
        o = out_flat[..., :need]
    else:
        o = jnp.pad(out_flat, ((0, 0), (0, 0), (0, need - Ltot)))
    return o.reshape(B, Cout, H, Wp)[..., :W]


def reference_forward(x, s, weight, *, demodulate=True, eps=1e-8):
    """Pure-JAX reference matching the PyTorch forward semantics (f32)."""
    B, Cin, H, W = x.shape
    Cout, _, K, _ = weight.shape
    c_scale = 1.0 / math.sqrt(Cin * K * K)
    weights = weight[None] * c_scale * s[:, None, :, None, None]   # (B,Cout,Cin,K,K)
    if demodulate:
        sigma_inv = jax.lax.rsqrt(
            jnp.sum(weights ** 2, axis=(2, 3, 4), keepdims=True) + eps)
        weights = weights * sigma_inv
    pad = (K - 1) // 2
    xp = jnp.pad(x, ((0, 0), (0, 0), (pad, pad), (pad, pad)))
    out = jnp.zeros((B, Cout, H, W), jnp.float32)
    for kh in range(K):
        for kw in range(K):
            out = out + jnp.einsum('boc,bchw->bohw',
                                   weights[:, :, :, kh, kw],
                                   xp[:, :, kh:kh + H, kw:kw + W])
    return out


if __name__ == "__main__":
    # Small, deterministic shapes consistent with the module's forward.
    B, Cin, Cout, K, H, W = 2, 4, 8, 3, 16, 16

    key = jax.random.PRNGKey(0)
    kx, ks, kw = jax.random.split(key, 3)
    x = jax.random.normal(kx, (B, Cin, H, W), dtype=jnp.float32)
    s = jax.random.normal(ks, (B, Cin), dtype=jnp.float32)
    weight = jax.random.normal(kw, (Cout, Cin, K, K), dtype=jnp.float32)

    # demodulate=True path
    fn = jax.jit(functools.partial(conv2d_weight_modulate, demodulate=True, eps=1e-8))
    out = jax.block_until_ready(fn(x, s, weight))
    ref = reference_forward(x, s, weight, demodulate=True, eps=1e-8)
    assert out.shape == (B, Cout, H, W), out.shape
    err = float(jnp.max(jnp.abs(out - ref)))
    # bf16 MXU operands with f32 accumulation -> loosened tolerance
    assert jnp.allclose(out, ref, atol=5e-2, rtol=5e-2), err

    # demodulate=False path (static trace-time branch)
    fn_nd = jax.jit(functools.partial(conv2d_weight_modulate, demodulate=False, eps=1e-8))
    out_nd = jax.block_until_ready(fn_nd(x, s, weight))
    ref_nd = reference_forward(x, s, weight, demodulate=False, eps=1e-8)
    err_nd = float(jnp.max(jnp.abs(out_nd - ref_nd)))
    assert jnp.allclose(out_nd, ref_nd, atol=5e-2, rtol=5e-2), err_nd

    print("KERNEL_OK")
</pallas_src>

<mosaic_0001>
module attributes {stable_mosaic.version = 11 : i64} {
  func.func @kernel(%arg0: i32, %arg1: i32, %arg2: i32, %arg3: memref<1x1x4xf32, #tpu.memory_space<vmem>>, %arg4: memref<1x1x36xf32, #tpu.memory_space<vmem>>, %arg5: memref<8x4xf32, #tpu.memory_space<vmem>>, %arg6: memref<8x36xbf16, #tpu.memory_space<vmem>>, %arg7: memref<1x1x4x512xbf16, #tpu.memory_space<vmem>>, %arg8: memref<1x8x384xf32, #tpu.memory_space<vmem>>, %arg9: memref<8x36xbf16, #tpu.memory_space<vmem>>, %arg10: memref<36x384xbf16, #tpu.memory_space<vmem>>) attributes {dimension_semantics = [#tpu.dimension_semantics<parallel>, #tpu.dimension_semantics<parallel>, #tpu.dimension_semantics<arbitrary>], iteration_bounds = array<i64: 2, 1, 1>, scalar_prefetch = 0 : i64, scratch_operands = 2 : i64, tpu.core_type = #tpu.core_type<tc>, window_params = [{transform_indices = @transform_0, window_bounds = array<i64: 1, 1, 4>}, {transform_indices = @transform_1, window_bounds = array<i64: 1, 1, 36>}, {transform_indices = @transform_2, window_bounds = array<i64: 8, 4>}, {transform_indices = @transform_3, window_bounds = array<i64: 8, 36>}, {transform_indices = @transform_4, window_bounds = array<i64: 1, 1, 4, 512>}, {transform_indices = @transform_5, window_bounds = array<i64: 1, 8, 384>}]} {
    %c0_i32 = arith.constant 0 : i32
    %0 = arith.cmpi eq, %arg2, %c0_i32 : i32
    %1 = arith.extui %0 : i1 to i32
    %c0_i32_0 = arith.constant 0 : i32
    %2 = arith.cmpi ne, %1, %c0_i32_0 : i32
    scf.if %2 {
      %c0_46 = arith.constant 0 : index
      %c0_47 = arith.constant 0 : index
      %36 = vector.load %arg6[%c0_46, %c0_47] : memref<8x36xbf16, #tpu.memory_space<vmem>>, vector<8x36xbf16>
      %37 = arith.extf %36 : vector<8x36xbf16> to vector<8x36xf32>
      %c0_48 = arith.constant 0 : index
      %c0_49 = arith.constant 0 : index
      %c0_50 = arith.constant 0 : index
      %38 = vector.load %arg4[%c0_48, %c0_49, %c0_50] : memref<1x1x36xf32, #tpu.memory_space<vmem>>, vector<1x1x36xf32>
      %39 = vector.shape_cast %38 : vector<1x1x36xf32> to vector<1x36xf32>
      %40 = vector.broadcast %39 : vector<1x36xf32> to vector<8x36xf32>
      %41 = arith.mulf %37, %40 : vector<8x36xf32>
      %c0_51 = arith.constant 0 : index
      %c0_52 = arith.constant 0 : index
      %c0_53 = arith.constant 0 : index
      %42 = vector.load %arg3[%c0_51, %c0_52, %c0_53] : memref<1x1x4xf32, #tpu.memory_space<vmem>>, vector<1x1x4xf32>
      %43 = vector.shape_cast %42 : vector<1x1x4xf32> to vector<1x4xf32>
      %c0_54 = arith.constant 0 : index
      %c0_55 = arith.constant 0 : index
      %44 = vector.load %arg5[%c0_54, %c0_55] : memref<8x4xf32, #tpu.memory_space<vmem>>, vector<8x4xf32>
      %45 = arith.mulf %43, %43 : vector<1x4xf32>
      %46 = vector.broadcast %45 : vector<1x4xf32> to vector<8x4xf32>
      %47 = arith.mulf %44, %46 : vector<8x4xf32>
      %cst_56 = arith.constant dense<0.000000e+00> : vector<8xf32>
      %48 = vector.multi_reduction <add>, %47, %cst_56 [1] : vector<8x4xf32> to vector<8xf32>
      %49 = vector.shape_cast %48 : vector<8xf32> to vector<8x1xf32>
      %cst_57 = arith.constant 9.99999993E-9 : f32
      %50 = vector.broadcast %cst_57 : f32 to vector<8x1xf32>
      %51 = arith.addf %49, %50 : vector<8x1xf32>
      %52 = math.rsqrt %51 : vector<8x1xf32>
      %53 = vector.broadcast %52 : vector<8x1xf32> to vector<8x36xf32>
      %54 = arith.mulf %41, %53 : vector<8x36xf32>
      %55 = arith.truncf %54 : vector<8x36xf32> to vector<8x36xbf16>
      %c0_58 = arith.constant 0 : index
      %c0_59 = arith.constant 0 : index
      %56 = vector.load %arg9[%c0_58, %c0_59] : memref<8x36xbf16, #tpu.memory_space<vmem>>, vector<8x36xbf16>
      tpu.vector_store %arg9[%c0_58, %c0_59], %55 {strides = array<i32>} : memref<8x36xbf16, #tpu.memory_space<vmem>>, vector<8x36xbf16>,
    } else {
    }
    %c0 = arith.constant 0 : index
    %c0_1 = arith.constant 0 : index
    %c0_2 = arith.constant 0 : index
    %c0_3 = arith.constant 0 : index
    %3 = vector.load %arg7[%c0, %c0_1, %c0_2, %c0_3] : memref<1x1x4x512xbf16, #tpu.memory_space<vmem>>, vector<1x1x4x384xbf16>
    %4 = vector.shape_cast %3 : vector<1x1x4x384xbf16> to vector<4x384xbf16>
    %c0_4 = arith.constant 0 : index
    %c0_5 = arith.constant 0 : index
    %5 = vector.load %arg10[%c0_4, %c0_5] : memref<36x384xbf16, #tpu.memory_space<vmem>>, vector<4x384xbf16>
    tpu.vector_store %arg10[%c0_4, %c0_5], %4 {strides = array<i32>} : memref<36x384xbf16, #tpu.memory_space<vmem>>, vector<4x384xbf16>,
    %c0_6 = arith.constant 0 : index
    %c0_7 = arith.constant 0 : index
    %c0_8 = arith.constant 0 : index
    %c1 = arith.constant 1 : index
    %6 = vector.load %arg7[%c0_6, %c0_7, %c0_8, %c1] : memref<1x1x4x512xbf16, #tpu.memory_space<vmem>>, vector<1x1x4x384xbf16>
    %7 = vector.shape_cast %6 : vector<1x1x4x384xbf16> to vector<4x384xbf16>
    %c4 = arith.constant 4 : index
    %c0_9 = arith.constant 0 : index
    %8 = vector.load %arg10[%c4, %c0_9] : memref<36x384xbf16, #tpu.memory_space<vmem>>, vector<4x384xbf16>
    tpu.vector_store %arg10[%c4, %c0_9], %7 {strides = array<i32>} : memref<36x384xbf16, #tpu.memory_space<vmem>>, vector<4x384xbf16>,
    %c0_10 = arith.constant 0 : index
    %c0_11 = arith.constant 0 : index
    %c0_12 = arith.constant 0 : index
    %c2 = arith.constant 2 : index
    %9 = vector.load %arg7[%c0_10, %c0_11, %c0_12, %c2] : memref<1x1x4x512xbf16, #tpu.memory_space<vmem>>, vector<1x1x4x384xbf16>
    %10 = vector.shape_cast %9 : vector<1x1x4x384xbf16> to vector<4x384xbf16>
    %c8 = arith.constant 8 : index
    %c0_13 = arith.constant 0 : index
    %11 = vector.load %arg10[%c8, %c0_13] : memref<36x384xbf16, #tpu.memory_space<vmem>>, vector<4x384xbf16>
    tpu.vector_store %arg10[%c8, %c0_13], %10 {strides = array<i32>} : memref<36x384xbf16, #tpu.memory_space<vmem>>, vector<4x384xbf16>,
    %c0_14 = arith.constant 0 : index
    %c0_15 = arith.constant 0 : index
    %c0_16 = arith.constant 0 : index
    %c18 = arith.constant 18 : index
    %12 = vector.load %arg7[%c0_14, %c0_15, %c0_16, %c18] : memref<1x1x4x512xbf16, #tpu.memory_space<vmem>>, vector<1x1x4x384xbf16>
    %13 = vector.shape_cast %12 : vector<1x1x4x384xbf16> to vector<4x384xbf16>
    %c12 = arith.constant 12 : index
    %c0_17 = arith.constant 0 : index
    %14 = vector.load %arg10[%c12, %c0_17] : memref<36x384xbf16, #tpu.memory_space<vmem>>, vector<4x384xbf16>
    tpu.vector_store %arg10[%c12, %c0_17], %13 {strides = array<i32>} : memref<36x384xbf16, #tpu.memory_space<vmem>>, vector<4x384xbf16>,
    %c0_18 = arith.constant 0 : index
    %c0_19 = arith.constant 0 : index
    %c0_20 = arith.constant 0 : index
    %c19 = arith.constant 19 : index
    %15 = vector.load %arg7[%c0_18, %c0_19, %c0_20, %c19] : memref<1x1x4x512xbf16, #tpu.memory_space<vmem>>, vector<1x1x4x384xbf16>
    %16 = vector.shape_cast %15 : vector<1x1x4x384xbf16> to vector<4x384xbf16>
    %c16 = arith.constant 16 : index
    %c0_21 = arith.constant 0 : index
    %17 = vector.load %arg10[%c16, %c0_21] : memref<36x384xbf16, #tpu.memory_space<vmem>>, vector<4x384xbf16>
    tpu.vector_store %arg10[%c16, %c0_21], %16 {strides = array<i32>} : memref<36x384xbf16, #tpu.memory_space<vmem>>, vector<4x384xbf16>,
    %c0_22 = arith.constant 0 : index
    %c0_23 = arith.constant 0 : index
    %c0_24 = arith.constant 0 : index
    %c20 = arith.constant 20 : index
    %18 = vector.load %arg7[%c0_22, %c0_23, %c0_24, %c20] : memref<1x1x4x512xbf16, #tpu.memory_space<vmem>>, vector<1x1x4x384xbf16>
    %19 = vector.shape_cast %18 : vector<1x1x4x384xbf16> to vector<4x384xbf16>
    %c20_25 = arith.constant 20 : index
    %c0_26 = arith.constant 0 : index
    %20 = vector.load %arg10[%c20_25, %c0_26] : memref<36x384xbf16, #tpu.memory_space<vmem>>, vector<4x384xbf16>
    tpu.vector_store %arg10[%c20_25, %c0_26], %19 {strides = array<i32>} : memref<36x384xbf16, #tpu.memory_space<vmem>>, vector<4x384xbf16>,
    %c0_27 = arith.constant 0 : index
    %c0_28 = arith.constant 0 : index
    %c0_29 = arith.constant 0 : index
    %c36 = arith.constant 36 : index
    %21 = vector.load %arg7[%c0_27, %c0_28, %c0_29, %c36] : memref<1x1x4x512xbf16, #tpu.memory_space<vmem>>, vector<1x1x4x384xbf16>
    %22 = vector.shape_cast %21 : vector<1x1x4x384xbf16> to vector<4x384xbf16>
    %c24 = arith.constant 24 : index
    %c0_30 = arith.constant 0 : index
    %23 = vector.load %arg10[%c24, %c0_30] : memref<36x384xbf16, #tpu.memory_space<vmem>>, vector<4x384xbf16>
    tpu.vector_store %arg10[%c24, %c0_30], %22 {strides = array<i32>} : memref<36x384xbf16, #tpu.memory_space<vmem>>, vector<4x384xbf16>,
    %c0_31 = arith.constant 0 : index
    %c0_32 = arith.constant 0 : index
    %c0_33 = arith.constant 0 : index
    %c37 = arith.constant 37 : index
    %24 = vector.load %arg7[%c0_31, %c0_32, %c0_33, %c37] : memref<1x1x4x512xbf16, #tpu.memory_space<vmem>>, vector<1x1x4x384xbf16>
    %25 = vector.shape_cast %24 : vector<1x1x4x384xbf16> to vector<4x384xbf16>
    %c28 = arith.constant 28 : index
    %c0_34 = arith.constant 0 : index
    %26 = vector.load %arg10[%c28, %c0_34] : memref<36x384xbf16, #tpu.memory_space<vmem>>, vector<4x384xbf16>
    tpu.vector_store %arg10[%c28, %c0_34], %25 {strides = array<i32>} : memref<36x384xbf16, #tpu.memory_space<vmem>>, vector<4x384xbf16>,
    %c0_35 = arith.constant 0 : index
    %c0_36 = arith.constant 0 : index
    %c0_37 = arith.constant 0 : index
    %c38 = arith.constant 38 : index
    %27 = vector.load %arg7[%c0_35, %c0_36, %c0_37, %c38] : memref<1x1x4x512xbf16, #tpu.memory_space<vmem>>, vector<1x1x4x384xbf16>
    %28 = vector.shape_cast %27 : vector<1x1x4x384xbf16> to vector<4x384xbf16>
    %c32 = arith.constant 32 : index
    %c0_38 = arith.constant 0 : index
    %29 = vector.load %arg10[%c32, %c0_38] : memref<36x384xbf16, #tpu.memory_space<vmem>>, vector<4x384xbf16>
    tpu.vector_store %arg10[%c32, %c0_38], %28 {strides = array<i32>} : memref<36x384xbf16, #tpu.memory_space<vmem>>, vector<4x384xbf16>,
    %c0_39 = arith.constant 0 : index
    %c0_40 = arith.constant 0 : index
    %30 = vector.load %arg9[%c0_39, %c0_40] : memref<8x36xbf16, #tpu.memory_space<vmem>>, vector<8x36xbf16>
    %c0_41 = arith.constant 0 : index
    %c0_42 = arith.constant 0 : index
    %31 = vector.load %arg10[%c0_41, %c0_42] : memref<36x384xbf16, #tpu.memory_space<vmem>>, vector<36x384xbf16>
    %cst = arith.constant dense<0.000000e+00> : vector<8x384xf32>
    %32 = tpu.matmul %30, %31, %cst {dimension_numbers = #tpu.dot_dimension_numbers<[1], [0], [0], [1], [0, 0, 1, 1], [], []>} : vector<8x36xbf16>, vector<36x384xbf16>, vector<8x384xf32> -> vector<8x384xf32>
    %c0_43 = arith.constant 0 : index
    %c0_44 = arith.constant 0 : index
    %c0_45 = arith.constant 0 : index
    %33 = vector.load %arg8[%c0_43, %c0_44, %c0_45] : memref<1x8x384xf32, #tpu.memory_space<vmem>>, vector<1x8x384xf32>
    %34 = vector.shape_cast %33 : vector<1x8x384xf32> to vector<8x384xf32>
    %35 = vector.shape_cast %32 : vector<8x384xf32> to vector<1x8x384xf32>
    tpu.vector_store %arg8[%c0_43, %c0_44, %c0_45], %35 {strides = array<i32>} : memref<1x8x384xf32, #tpu.memory_space<vmem>>, vector<1x8x384xf32>,
    return
  }
  func.func @transform_0(%arg0: i32, %arg1: i32, %arg2: i32) -> (i32, i32, i32) {
    %c0_i32 = arith.constant 0 : i32
    %c0_i32_0 = arith.constant 0 : i32
    %c0_i32_1 = arith.constant 0 : i32
    return %arg0, %c0_i32, %c0_i32_0 : i32, i32, i32
  }
  func.func @transform_1(%arg0: i32, %arg1: i32, %arg2: i32) -> (i32, i32, i32) {
    %c0_i32 = arith.constant 0 : i32
    %c0_i32_0 = arith.constant 0 : i32
    %c0_i32_1 = arith.constant 0 : i32
    return %arg0, %c0_i32, %c0_i32_0 : i32, i32, i32
  }
  func.func @transform_2(%arg0: i32, %arg1: i32, %arg2: i32) -> (i32, i32) {
    %c0_i32 = arith.constant 0 : i32
    %c0_i32_0 = arith.constant 0 : i32
    return %arg1, %c0_i32 : i32, i32
  }
  func.func @transform_3(%arg0: i32, %arg1: i32, %arg2: i32) -> (i32, i32) {
    %c0_i32 = arith.constant 0 : i32
    %c0_i32_0 = arith.constant 0 : i32
    return %arg1, %c0_i32 : i32, i32
  }
  func.func @transform_4(%arg0: i32, %arg1: i32, %arg2: i32) -> (i32, i32, i32, i32) {
    %c0_i32 = arith.constant 0 : i32
    %c0_i32_0 = arith.constant 0 : i32
    %c0_i32_1 = arith.constant 0 : i32
    return %arg0, %arg2, %c0_i32, %c0_i32_0 : i32, i32, i32, i32
  }
  func.func @transform_5(%arg0: i32, %arg1: i32, %arg2: i32) -> (i32, i32, i32) {
    %c0_i32 = arith.constant 0 : i32
    return %arg0, %arg1, %arg2 : i32, i32, i32
  }
}

</mosaic_0001>

<bundles_post_ra>
// kernel: conv2d_weight_modulate.1
= control target key start
LH: loop header
LB: loop body
LE: loop exit
PB: predicated region body
PF: predicated region fallthrough
CT: control target
= control target key end

     0   :  { %s969_s18 = smov 0   ;;  %s971_s19 = smov 0   ;;  %s1069_s0 = inlined_call_operand.vmem [shape: f32[2,1,4], index: 0, kind: input, shape index: {}]   ;;  %s1070_s1 = inlined_call_operand.vmem [shape: f32[2,1,36], index: 1, kind: input, shape index: {}]   ;;  %s1071_s2 = inlined_call_operand.vmem [shape: f32[8,4], index: 2, kind: input, shape index: {}]   ;;  %s1072_s3 = inlined_call_operand.vmem [shape: bf16[8,36], index: 3, kind: input, shape index: {}]   ;;  %s1073_s4 = inlined_call_operand.vmem [shape: bf16[2,1,4,512], index: 4, kind: input, shape index: {}]   ;;  %s1074_s5 = inlined_call_operand.vmem [shape: f32[2,8,384], index: 5, kind: output, shape index: {}]  }
   0x1   :  { %s973_s20 = smov 0  }
   0x2 LB: > { %s34_s21 = sadd.s32 1, %s925_s19  ;;  %p831_p0 = scmp.ge.s32.totalorder %s929_s20, 1  ;;  %s929_s20 = sphi %s973_s20, %s15_s20   ;;  %s925_s19 = sphi %s971_s19, %s1076_s19   ;;  %s921_s18 = sphi %s969_s18, %s1075_s18  }
   0x3   : > { %p36_p1 = scmp.ge.s32.totalorder %s34_s21, 2  ;;  %p250_p2 = scmp.lt.s32.totalorder %s929_s20, 3 }
   0x5   : > { %s1078_s21 = smov (%p36_p1, %s34_s21), 0  ;;  %p251_p3 = pnand %p831_p0, %p250_p2 }
   0x6   : > { %p304_p4 = scmp.lt.s32.totalorder (!%p251_p3), %s921_s18, 1  ;;  %s931_s9 = smov (!%p251_p3), 127  }
   0x7   : > { %254 = sbr.rel (%p251_p3) target bundleno = 372 (0x174), region = 40  ;;  %s932_s10 = smov (!%p251_p3), 126  }
   0x8   : > { %s933_s11 = smov (!%p251_p3), 110   ;;  %s934_s12 = smov (!%p251_p3), 109  }
   0x9   : > { %s935_s13 = smov (!%p251_p3), 108   ;;  %s936_s14 = smov (!%p251_p3), 92  }
   0xa   : > { %s937_s15 = smov (!%p251_p3), 91   ;;  %s938_s16 = smov (!%p251_p3), 90  }
   0xc   : > { %s1080_s18 = smov (!%p304_p4, %s921_s18), 1  ;;  %v354_v3 = vld [vmem:[%s1071_s2] sm:$0xff]  ;;  %vm360_vm0 = vcmask 31744   ;;  %vm404_vm1 = vcmask 1039360   ;;  %vm447_vm2 = vcmask 900096   ;;  %vm490_vm5 = vcmask 883712  }
   0xd   : > { %s306_s24 = scalar_lea.vmem %s1069_s0, %s1080_s18  ;;  %s864_s25 = sshll.u32 %s1080_s18, 3  ;;  %v346_v35 = vld [vmem:[%s1072_s3] sm:$0xf]  ;;  %vm425_vm7 = vcmask 1031168   ;;  %vm377_vm8 = vcmask 289792   ;;  %vm511_vm9 = vcmask 752640  }
   0xe   : > { %s326_s28 = scalar_lea.vmem %s1073_s4, %s864_s25  ;;  %v353_v0 = vld [vmem:[%s306_s24] sm:$0x1]  ;;  %s309_s8 = scalar_lea.vmem %s1070_s1, %s1080_s18  ;;  %v347_v38 = vunpack.c.l.bf16 %v346_v35  ;;  %vm468_vm10 = vcmask 891904   ;;  %vm402_vm11 = vcmask 1043456   ;;  %vm533_vm12 = vcmask 744448  }
   0xf   : > { %v355_v1 = vmul.f32 %v353_v0, %v353_v0  ;;  %v379_v2 = vld [vmem:[%s326_s28] sm:$0x3f]  ;;  %vm554_vm13 = vcmask 736256   ;;  %vm616_vm14 = vcmask 1041408   ;;  %vm612_vm15 = vcmask 293888   ;;  %s871_s25 = smul.u32 24, %s1080_s18 }
  0x10   : > { %381 = vst [vmem:[#allocation1] ss:$2 sm:$0xff] %v379_v2  ;;  %v388_v7 = vld [vmem:[%s326_s28] sm:$0xff] }
  0x11   : > { %v357_v4 = vperm.slane %v355_v1, 0  ;;  %v904_v39 = vld [vmem:[%s309_s8] ss:$0 sm:$0xff]  ;;  %s339_s28 = scalar_lea.vmem %s1074_s5, %s871_s25 }
  0x12   : > { %v352_v43 = vmul.f32 %v904_v39, %v347_v38 }
  0x13   : > { %v359_v5 = vmul.f32 %v357_v4, %v354_v3 }
  0x15   : > { %v361_v6 = vsel %vm360_vm0, %v359_v5, 0.0 }
  0x16   : > { %362 = vadd.xlane.f32.xlu0 %v361_v6 }
  0x17   : > { %v382_v8 = vld.sshfl [vmem:[#allocation1] sm:$0xff pattern:$0x75643120]  ;;  %v383_v9 = vld.sshfl [vmem:[#allocation1 + $0x8] sm:$0xff pattern:$0x75643120] }
  0x18   : > { %391 = vst [vmem:[#allocation1 + $0x1] ss:$2 sm:$0xff] %v388_v7 }
  0x19   : > { %386 = vst [vmem:[#allocation3] sm:$0x33] %v382_v8 }
  0x1a   : > { %387 = vst [vmem:[#allocation3 + $0x8] sm:$0x3] %v383_v9 }
  0x1f   : > { %v394_v10 = vld.sshfl [vmem:[#allocation1 + $0x8] sm:$0xff pattern:$0x75643120]  ;;  %v392_v11 = vld.sshfl [vmem:[#allocation1] sm:$0xff pattern:$0x75643120] }
  0x20   : > { %398 = vrot.lane.b32.xlu2 %v394_v10, %s931_s9  ;;  %413 = vst [vmem:[#allocation1] ss:$2 sm:$0xff] %v388_v7 }
  0x27   : > { %v414_v12 = vld.sshfl [vmem:[#allocation1] sm:$0xff pattern:$0x75643120]  ;;  %v416_v13 = vld.sshfl [vmem:[#allocation1 + $0x8] sm:$0xff pattern:$0x75643120] }
  0x28   : > { %435 = vst [vmem:[#allocation1 + $0x1] ss:$2 sm:$0xff] %v388_v7  ;;  %420 = vrot.lane.b32.xlu1 %v416_v13, %s932_s10 }
  0x2f   : > { %v438_v14 = vld.sshfl [vmem:[#allocation1 + $0x8] sm:$0xff pattern:$0x75643120]  ;;  %v436_v15 = vld.sshfl [vmem:[#allocation1] sm:$0xff pattern:$0x75643120] }
  0x30   : > { %442 = vrot.lane.b32.xlu2 %v438_v14, %s933_s11  ;;  %456 = vst [vmem:[#allocation1] ss:$2 sm:$0xff] %v388_v7 }
  0x37   : > { %v457_v16 = vld.sshfl [vmem:[#allocation1] sm:$0xff pattern:$0x75643120]  ;;  %v459_v17 = vld.sshfl [vmem:[#allocation1 + $0x8] sm:$0xff pattern:$0x75643120] }
  0x38   : > { %478 = vst [vmem:[#allocation1 + $0x1] ss:$2 sm:$0xff] %v388_v7  ;;  %463 = vrot.lane.b32.xlu1 %v459_v17, %s934_s12  ;;  %461 = vrot.lane.b32.xlu0 %v457_v16, %s934_s12 }
  0x3f   : > { %v481_v18 = vld.sshfl [vmem:[#allocation1 + $0x8] sm:$0xff pattern:$0x75643120]  ;;  %v479_v19 = vld.sshfl [vmem:[#allocation1] sm:$0xff pattern:$0x75643120] }
  0x40   : > { %485 = vrot.lane.b32.xlu2 %v481_v18, %s935_s13  ;;  %499 = vst [vmem:[#allocation1] ss:$2 sm:$0xff] %v388_v7 }
  0x47   : > { %v502_v20 = vld.sshfl [vmem:[#allocation1 + $0x8] sm:$0xff pattern:$0x75643120]  ;;  %v500_v21 = vld.sshfl [vmem:[#allocation1] sm:$0xff pattern:$0x75643120] }
  0x48   : > { %506 = vrot.lane.b32.xlu2 %v502_v20, %s936_s14  ;;  %521 = vst [vmem:[#allocation1 + $0x1] ss:$2 sm:$0xff] %v388_v7 }
  0x4f   : > { %v524_v22 = vld.sshfl [vmem:[#allocation1 + $0x8] sm:$0xff pattern:$0x75643120]  ;;  %v522_v23 = vld.sshfl [vmem:[#allocation1] sm:$0xff pattern:$0x75643120] }
  0x50   : > { %504 = vrot.lane.b32.xlu2 %v500_v21, %s936_s14  ;;  %528 = vrot.lane.b32.xlu1 %v524_v22, %s937_s15  ;;  %542 = vst [vmem:[#allocation1] ss:$2 sm:$0xff] %v388_v7 }
  0x57   : > { %v543_v24 = vld.sshfl [vmem:[#allocation1] sm:$0xff pattern:$0x75643120]  ;;  %v545_v25 = vld.sshfl [vmem:[#allocation1 + $0x8] sm:$0xff pattern:$0x75643120] }
  0x58   : > { %418 = vrot.lane.b32.xlu2 %v414_v12, %s932_s10  ;;  %547 = vrot.lane.b32.xlu1 %v543_v24, %s938_s16 }
  0x59   : > { %549 = vrot.lane.b32.xlu0 %v545_v25, %s938_s16 }
  0x60   : > { %483 = vrot.lane.b32.xlu1 %v479_v19, %s935_s13 }
  0x61   : > { %526 = vrot.lane.b32.xlu0 %v522_v23, %s937_s15 }
  0x68   : > { %396 = vrot.lane.b32.xlu1 %v392_v11, %s931_s9 }
  0x69   : > { %440 = vrot.lane.b32.xlu0 %v436_v15, %s933_s11 }
  0x7a   : > { %v1010_v26 = vpop.permute.xlu2 %398 }
  0x7b   : > { %v401_v27 = vrot.slane %v1010_v26, 4 }
  0x7d   : > { %v406_v28 = vsel %vm404_vm1, %v1010_v26, %v401_v27 }
  0x7e   : > { %410 = vst [vmem:[#allocation3 + $0x8] sm:$0xc] %v406_v28 }
  0x89   : > { %v363_v29 = vpop.xlane.xlu0 %362 }
  0x8a   : > { %v1017_v30 = vpop.permute.xlu2 %442  ;;  %v364_v31 = vadd.f32 1e-08, %v363_v29 }
  0x8b   : > { %v445_v32 = vrot.slane %v1017_v30, 4 }
  0x8c   : > { %905 = vrsqrt.f32 %v364_v31  ;;  %vm371_vm3 = vweird.f32 %v364_v31 }
  0x8d   : > { %v449_v33 = vsel %vm447_vm2, %v1017_v30, %v445_v32 }
  0x8e   : > { %453 = vst [vmem:[#allocation3 + $0x14] sm:$0xc] %v449_v33 }
  0x92   : > { %v906_v34 = vpop.eup %905 }
  0x93   : > { %v366_v36 = vmul.f32 %v906_v34, %v364_v31  ;;  %vm372_vm4 = vweird.f32 %v906_v34 }
  0x94   : > { %vm373_vm6 = vmor %vm371_vm3, %vm372_vm4 }
  0x95   : > { %v367_v37 = vmul.f32 %v906_v34, %v366_v36 }
  0x97   : > { %v368_v40 = vmul.f32 0.5, %v367_v37 }
  0x99   : > { %v369_v41 = vsub.f32 1.5, %v368_v40 }
  0x9a   : > { %v1032_v42 = vpop.permute.xlu2 %485  ;;  %v421_v44 = vpop.permute.xlu1 %420 }
  0x9b   : > { %v488_v45 = vrot.slane %v1032_v42, 4  ;;  %v370_v46 = vmul.f32 %v906_v34, %v369_v41  ;;  %v423_v47 = vrot.slane %v421_v44, 4 }
  0x9d   : > { %v492_v48 = vsel %vm490_vm5, %v1032_v42, %v488_v45  ;;  %v374_v49 = vsel %vm373_vm6, %v906_v34, %v370_v46  ;;  %v427_v50 = vsel %vm425_vm7, %v421_v44, %v423_v47 }
  0x9e   : > { %496 = vst [vmem:[#allocation3 + $0x20] sm:$0xc] %v492_v48  ;;  %v375_v51 = vmul.f32 %v374_v49, %v352_v43 }
  0x9f   : > { %431 = vst [vmem:[#allocation3 + $0x14] sm:$0x3] %v427_v50 }
  0xa0   : > { %v376_v52 = vpack.c.bf16 %v375_v51, %v375_v51 }
  0xa2   : > { %378 = vst.msk [vmem:[#allocation2] sm:$0xf] %vm377_vm8, %v376_v52  ;;  %v507_v53 = vpop.permute.xlu2 %506 }
  0xa3   : > { %v509_v54 = vrot.slane %v507_v53, 4 }
  0xa5   : > { %v513_v55 = vsel %vm511_vm9, %v507_v53, %v509_v54 }
  0xa6   : > { %517 = vst [vmem:[#allocation3 + $0x2c] sm:$0x3] %v513_v55  ;;  %v867_v53 = vld [vmem:[#allocation3 + $0x10] sm:$0xf0] }
  0xa9   : > { %v561_v30 = vld [vmem:[#allocation2] sm:$0xf] }
  0xaa   : > { %v505_v56 = vpop.permute.xlu2 %504  ;;  %v464_v57 = vpop.permute.xlu1 %463 }
  0xab   : > { %v508_v58 = vrot.slane %v505_v56, 4  ;;  %v466_v59 = vrot.slane %v464_v57, 4  ;;  %v462_v60 = vpop.permute.xlu0 %461 }
  0xac   : > { %v465_v61 = vrot.slane %v462_v60, 4 }
  0xad   : > { %v510_v62 = vsel %vm402_vm11, %v508_v58, %v509_v54  ;;  %v470_v63 = vsel %vm468_vm10, %v464_v57, %v466_v59 }
  0xae   : > { %v512_v0 = vsel %vm511_vm9, %v505_v56, %v510_v62  ;;  %474 = vst [vmem:[#allocation3 + $0x20] sm:$0x3] %v470_v63  ;;  %v467_v1 = vsel %vm402_vm11, %v465_v61, %v466_v59 }
  0xaf   : > { %516 = vst [vmem:[#allocation3 + $0x24] sm:$0x33] %v512_v0  ;;  %v469_v2 = vsel %vm468_vm10, %v462_v60, %v467_v1 }
  0xb0   : > { %473 = vst [vmem:[#allocation3 + $0x18] sm:$0x33] %v469_v2 }
  0xb2   : > { %v419_v3 = vpop.permute.xlu2 %418 }
  0xb3   : > { %v422_v4 = vrot.slane %v419_v3, 4 }
  0xb5   : > { %v424_v5 = vsel %vm402_vm11, %v422_v4, %v423_v47  ;;  %v857_v46 = vld [vmem:[#allocation3 + $0x20] sm:$0xf]  ;;  %v845_v47 = vld [vmem:[#allocation3 + $0x8] sm:$0xf] }
  0xb6   : > { %v426_v6 = vsel %vm425_vm7, %v419_v3, %v424_v5  ;;  %v846_v57 = vor.u32 %v867_v53, %v845_v47 }
  0xb7   : > { %430 = vst [vmem:[#allocation3 + $0xc] sm:$0x33] %v426_v6 }
  0xc2   : > { %v529_v7 = vpop.permute.xlu1 %528 }
  0xc3   : > { %v531_v8 = vrot.slane %v529_v7, 4 }
  0xc5   : > { %v535_v9 = vsel %vm533_vm12, %v529_v7, %v531_v8 }
  0xc6   : > { %539 = vst [vmem:[#allocation3 + $0x2c] sm:$0xc] %v535_v9 }
  0xca   : > { %v548_v10 = vpop.permute.xlu1 %547 }
  0xcb   : > { %v551_v11 = vrot.slane %v548_v10, 4  ;;  %v550_v12 = vpop.permute.xlu0 %549 }
  0xcc   : > { %v552_v13 = vrot.slane %v550_v12, 4 }
  0xcd   : > { %v870_v41 = vld [vmem:[#allocation3 + $0x28] sm:$0xf0] }
  0xce   : > { %v553_v14 = vsel %vm402_vm11, %v551_v11, %v552_v13  ;;  %v556_v15 = vsel %vm554_vm13, %v550_v12, %v552_v13  ;;  %v858_v50 = vor.u32 %v870_v41, %v857_v46 }
  0xcf   : > { %v555_v16 = vsel %vm554_vm13, %v548_v10, %v553_v14  ;;  %560 = vst [vmem:[#allocation3 + $0x38] sm:$0x3] %v556_v15 }
  0xd0   : > { %559 = vst [vmem:[#allocation3 + $0x30] sm:$0x33] %v555_v16 }
  0xd2   : > { %v484_v17 = vpop.permute.xlu1 %483 }
  0xd3   : > { %v487_v18 = vrot.slane %v484_v17, 4  ;;  %v527_v19 = vpop.permute.xlu0 %526 }
  0xd4   : > { %v530_v20 = vrot.slane %v527_v19, 4 }
  0xd5   : > { %v489_v21 = vsel %vm402_vm11, %v487_v18, %v488_v45 }
  0xd6   : > { %v491_v22 = vsel %vm490_vm5, %v484_v17, %v489_v21  ;;  %v532_v23 = vsel %vm402_vm11, %v530_v20, %v531_v8  ;;  %v571_v24 = vld [vmem:[#allocation3 + $0x38] sm:$0x3] }
  0xd7   : > { %495 = vst [vmem:[#allocation3 + $0x18] sm:$0xcc] %v491_v22  ;;  %v534_v25 = vsel %vm533_vm12, %v527_v19, %v532_v23  ;;  %v596_v28 = vunpack.c.l.b16 %v571_v24  ;;  %v570_v29 = vld [vmem:[#allocation3 + $0x30] sm:$0x33] }
  0xd8   : > { %538 = vst [vmem:[#allocation3 + $0x24] sm:$0xcc] %v534_v25  ;;  %v594_v31 = vunpack.c.l.b16 %v570_v29  ;;  %v595_v33 = vunpack.c.h.b16 %v570_v29 }
  0xd9   : > { %v605_v34 = vpack.c.b16 %v596_v28, %v596_v28 }
  0xda   : > { %v397_v35 = vpop.permute.xlu1 %396  ;;  %v603_v36 = vpack.c.b16 %v594_v31, %v594_v31  ;;  %v604_v37 = vpack.c.b16 %v595_v33, %v595_v33 }
  0xdb   : > { %v400_v38 = vrot.slane %v397_v35, 4  ;;  %v441_v39 = vpop.permute.xlu0 %440  ;;  %v624_v40 = vsel %vm616_vm14, %v605_v34, 0 }
  0xdc   : > { %v444_v42 = vrot.slane %v441_v39, 4  ;;  %657 = vmatpush.bf16.msra.mxu2 %v624_v40  ;;  %v618_v43 = vsel %vm616_vm14, %v603_v36, 0  ;;  %v621_v44 = vsel %vm616_vm14, %v604_v37, 0 }
  0xdd   : > { %v403_v45 = vsel %vm402_vm11, %v400_v38, %v401_v27  ;;  %631 = vmatpush.bf16.msra.mxu0 %v618_v43  ;;  %644 = vmatpush.bf16.msra.mxu1 %v621_v44 }
  0xde   : > { %v405_v48 = vsel %vm404_vm1, %v397_v35, %v403_v45  ;;  %v446_v49 = vsel %vm402_vm11, %v444_v42, %v445_v32  ;;  %v849_v51 = vld [vmem:[#allocation3 + $0x18] sm:$0xf]  ;;  %v868_v52 = vld [vmem:[#allocation3 + $0x1c] sm:$0xf] }
  0xdf   : > { %409 = vst [vmem:[#allocation3] sm:$0xcc] %v405_v48  ;;  %v448_v54 = vsel %vm447_vm2, %v441_v39, %v446_v49  ;;  %v869_v26 = vld [vmem:[#allocation3 + $0x20] sm:$0xf0]  ;;  %v851_v55 = vld [vmem:[#allocation3 + $0x24] sm:$0xf0] }
  0xe0   : > { %452 = vst [vmem:[#allocation3 + $0xc] sm:$0xcc] %v448_v54  ;;  %658 = vmatpush.bf16.msra.mxu2 %v858_v50  ;;  %v850_v27 = vor.u32 %v869_v26, %v849_v51  ;;  %v854_v56 = vor.u32 %v868_v52, %v851_v55 }
  0xe2   : > { %632 = vmatpush.bf16.msra.mxu0 %v850_v27  ;;  %645 = vmatpush.bf16.msra.mxu1 %v854_v56 }
  0xe4   : > { %659 = vmatpush.bf16.msra.mxu2 %v846_v57 }
  0xe6   : > { %v837_v32 = vld [vmem:[#allocation3] sm:$0xf]  ;;  %v865_v58 = vld [vmem:[#allocation3 + $0x4] sm:$0xf] }
  0xe7   : > { %861 = vmatmul.msk.bf16.vlgmr.msra.gmra.mxu2 %vm612_vm15, %v561_v30  ;;  %v866_v59 = vld [vmem:[#allocation3 + $0x8] sm:$0xf0]  ;;  %v839_v60 = vld [vmem:[#allocation3 + $0xc] sm:$0xf0] }
  0xe8   : > { %v838_v61 = vor.u32 %v866_v59, %v837_v32  ;;  %v842_v62 = vor.u32 %v865_v58, %v839_v60 }
  0xea   : > { %633 = vmatpush.bf16.msra.mxu0 %v838_v61  ;;  %646 = vmatpush.bf16.msra.mxu1 %v842_v62 }
  0xed   : > { %859 = vmatmul.msk.bf16.vlgmr.msra.gmra.mxu0 %vm612_vm15, %v561_v30  ;;  %860 = vmatmul.msk.bf16.vlgmr.msra.gmra.mxu1 %vm612_vm15, %v561_v30 }
 0x16a   : > { %v635_v63 = vpop.f32.mrf.mxu0  ;;  %v648_v0 = vpop.f32.mrf.mxu1 }
 0x16b   : > { %665 = vst [vmem:[%s339_s28] sm:$0xff] %v635_v63  ;;  %v661_v1 = vpop.f32.mrf.mxu2 }
 0x16c   : > { %666 = vst [vmem:[%s339_s28 + $0x8] sm:$0xff] %v648_v0 }
 0x16d   : > { %667 = vst [vmem:[%s339_s28 + $0x10] sm:$0xff] %v661_v1 }
 0x172   : > { %v637_v2 = vpop.f32.mrf.mxu0  ;;  %v650_v3 = vpop.f32.mrf.mxu1 }
 0x173   : > { %v663_v4 = vpop.f32.mrf.mxu2 }
 0x174 PF: > { %s15_s20 = sadd.s32 1, %s929_s20   ;;  %s1075_s18 = smov %s925_s19 }
 0x175   : > { %p12_p5 = scmp.ge.s32.totalorder %s15_s20, 4   ;;  %s1076_s19 = smov %s1078_s21 }
 0x177   :  { %14 = sbr.rel (!%p12_p5) target bundleno = 2 (0x2), region = 90 }

</bundles_post_ra>
